<compile_context>
chip_gen: v5e
topology: v5e:2x2
jax: 0.10.0
libtpu: 0.0.40
codegen_flags: <defaults>
</compile_context>

<pallas_src>
import jax
import jax.numpy as jnp
from jax.experimental import pallas as pl
from jax.experimental.pallas import tpu as pltpu


def _matmul_kernel(p_ref, x_ref, o_ref):
    """o = p @ x  (single padded MXU pass, single full-block store)."""
    # Output dtype is float32 and the dot accumulates in f32 -> no cast needed.
    o_ref[...] = jnp.dot(p_ref[...], x_ref[...],
                         preferred_element_type=jnp.float32)


def _round_up(a, b):
    return -(-a // b) * b


# Conservative gridless-path VMEM budget: safely under the scoped defaults
# (16 MiB on v5e, 32 MiB on v6e/v7x) with room for double-buffering slack.
_GRIDLESS_VMEM_BUDGET = 16 << 20


def model_forward(params1, params2, x, *, tn_max=8192, gridless_max_n=8192):
    """Equivalent of Model.forward: y = cat([params1, params2], dim=0) @ x."""
    m1, k1 = params1.shape
    m2, k2 = params2.shape
    k, n = x.shape
    assert k1 == k and k2 == k, f"inner dims mismatch: {k1}/{k2} vs {k}"
    m = m1 + m2

    # 120-byte concat; done once in the wrapper (hoisted under jit).  Fusing it
    # into the kernel buys nothing and would cost an in-kernel sublane shuffle
    # plus an extra input DMA channel.
    params = jnp.concatenate([params1, params2], axis=0)

    out_shape = jax.ShapeDtypeStruct((m, n), jnp.float32)

    # Padded-footprint estimate for the gridless (whole-operand-resident) path.
    vmem_bytes = 4 * (
        _round_up(m, 8) * _round_up(k, 128)      # params
        + _round_up(k, 8) * _round_up(n, 128)    # x
        + _round_up(m, 8) * _round_up(n, 128)    # y
    )

    if n <= gridless_max_n and vmem_bytes <= _GRIDLESS_VMEM_BUDGET:
        # Launch-overhead-bound regime: gridless call, everything explicitly
        # resident in VMEM, one kernel invocation -- no grid loop, index_map
        # evaluation, or pipelining scaffolding.
        return pl.pallas_call(
            _matmul_kernel,
            out_shape=out_shape,
            in_specs=[
                pl.BlockSpec(memory_space=pltpu.MemorySpace.VMEM),
                pl.BlockSpec(memory_space=pltpu.MemorySpace.VMEM),
            ],
            out_specs=pl.BlockSpec(memory_space=pltpu.MemorySpace.VMEM),
        )(params, x)

    # Memory-streaming regime: tile only the N axis with large lane-dense
    # tiles.  Pick TN so there are always >= 2 tiles (both v7x TensorCores get
    # work via the "parallel" axis), capped at tn_max.
    tn = max(128, min(tn_max, _round_up(pl.cdiv(n, 2), 128)))
    grid = (pl.cdiv(n, tn),)

    return pl.pallas_call(
        _matmul_kernel,
        out_shape=out_shape,
        grid=grid,
        in_specs=[
            # params: constant index_map -> stays resident, no re-DMA.
            pl.BlockSpec((m, k), lambda j: (0, 0)),
            # x: streamed lane-dense N tiles.
            pl.BlockSpec((k, tn), lambda j: (0, j)),
        ],
        out_specs=pl.BlockSpec((m, tn), lambda j: (0, j)),
        compiler_params=pltpu.CompilerParams(
            # Independent N tiles -> shard across both TensorCores on v7x
            # (no-op on single-TC v5e/v6e).
            dimension_semantics=("parallel",),
        ),
    )(params, x)


if __name__ == "__main__":
    key = jax.random.PRNGKey(0)
    k1, k2, kx1, kx2 = jax.random.split(key, 4)

    # Deterministic "torch.randn(3, 5)"-style parameters.
    params1 = jax.random.normal(k1, (3, 5), dtype=jnp.float32)
    params2 = jax.random.normal(k2, (3, 5), dtype=jnp.float32)

    # Small, lane-dense input (N = 128) -> exercises the gridless path.
    x_small = jax.random.normal(kx1, (5, 128), dtype=jnp.float32)
    y_small = jax.block_until_ready(model_forward(params1, params2, x_small))

    # N = 1024 with a lowered gridless cutoff -> exercises the tiled path
    # (TN = 512, grid of 2 lane-dense tiles) while keeping the demo small.
    x_med = jax.random.normal(kx2, (5, 1024), dtype=jnp.float32)
    y_med = jax.block_until_ready(
        model_forward(params1, params2, x_med, gridless_max_n=512))

    # Reference check in plain JAX.
    params_ref = jnp.concatenate([params1, params2], axis=0)
    ref_small = params_ref @ x_small
    ref_med = params_ref @ x_med

    assert y_small.shape == (6, 128)
    assert y_med.shape == (6, 1024)
    assert jnp.allclose(y_small, ref_small, atol=1e-5, rtol=1e-5)
    assert jnp.allclose(y_med, ref_med, atol=1e-5, rtol=1e-5)

    print("KERNEL_OK")
</pallas_src>

<mosaic_0001>
module attributes {stable_mosaic.version = 11 : i64} {
  func.func @_matmul_kernel(%arg0: memref<6x5xf32, #tpu.memory_space<vmem>>, %arg1: memref<5x128xf32, #tpu.memory_space<vmem>>, %arg2: memref<6x128xf32, #tpu.memory_space<vmem>>) attributes {dimension_semantics = [], scalar_prefetch = 0 : i64, scratch_operands = 0 : i64, tpu.core_type = #tpu.core_type<tc>} {
    %c0 = arith.constant 0 : index
    %c0_0 = arith.constant 0 : index
    %0 = vector.load %arg0[%c0, %c0_0] : memref<6x5xf32, #tpu.memory_space<vmem>>, vector<6x5xf32>
    %c0_1 = arith.constant 0 : index
    %c0_2 = arith.constant 0 : index
    %1 = vector.load %arg1[%c0_1, %c0_2] : memref<5x128xf32, #tpu.memory_space<vmem>>, vector<5x128xf32>
    %cst = arith.constant dense<0.000000e+00> : vector<6x128xf32>
    %2 = tpu.matmul %0, %1, %cst {dimension_numbers = #tpu.dot_dimension_numbers<[1], [0], [0], [1], [0, 0, 1, 1], [], []>} : vector<6x5xf32>, vector<5x128xf32>, vector<6x128xf32> -> vector<6x128xf32>
    %c0_3 = arith.constant 0 : index
    %c0_4 = arith.constant 0 : index
    %3 = vector.load %arg2[%c0_3, %c0_4] : memref<6x128xf32, #tpu.memory_space<vmem>>, vector<6x128xf32>
    tpu.vector_store %arg2[%c0_3, %c0_4], %2 {strides = array<i32>} : memref<6x128xf32, #tpu.memory_space<vmem>>, vector<6x128xf32>,
    return
  }
}

</mosaic_0001>

<bundles_post_ra>
// kernel: tpu_custom_call.1
= control target key start
LH: loop header
LB: loop body
LE: loop exit
PB: predicated region body
PF: predicated region fallthrough
CT: control target
= control target key end

     0   :  { %7 = vsyncpa [#allocation3], 0  ;;  %s199_s0 = inlined_call_operand.hbm [shape: f32[6,5], index: 0, kind: input, shape index: {}]   ;;  %s200_s1 = inlined_call_operand.hbm [shape: f32[5,128], index: 1, kind: input, shape index: {}]   ;;  %s201_s2 = inlined_call_operand.hbm [shape: f32[6,128], index: 2, kind: output, shape index: {}]  }
   0x1   :  { %8 = vsyncpa [#allocation6], 0 }
   0x2   :  { %9 = vsyncpa [#allocation4], 0  ;;  %s15_s11 = sshll.u32 %s199_s0, 4  ;;  %s172_s12 = smov [#allocation2]   ;;  %s16_s11 = int_to_ptr.hbm [resolvable:$true] %s15_s11 }
   0x3   :  { %s17_s13 = sshll.u32 %s172_s12, 4  ;;  %s26_s16 = sshll.u32 %s200_s1, 4  ;;  %s18_s13 = int_to_ptr.vmem [resolvable:$true] %s17_s13  ;;  %s27_s16 = int_to_ptr.hbm [resolvable:$true] %s26_s16 }
   0x4   :  { %20 = dma.hbm_to_vmem [thread:$0]  %s16_s11, 128, %s18_s13, [#allocation3]  }
   0x5   :  { %s173_s17 = smov [#allocation5]  }
   0x6   :  { %s28_s18 = sshll.u32 %s173_s17, 4  ;;  %s29_s18 = int_to_ptr.vmem [resolvable:$true] %s28_s18 }
   0x7   :  { %31 = dma.hbm_to_vmem [thread:$0]  %s27_s16, 128, %s29_s18, [#allocation6]  }
   0x8   :  { %166 = dma.done.wait [#allocation3], 128  }
   0x9   :  { %167 = vsyncadd [#allocation3], 4294967168 }
   0xa   :  { %168 = dma.done.wait [#allocation6], 128  }
   0xb   :  { %169 = vsyncadd [#allocation6], 4294967168  ;;  %vm46_vm0 = vcmask 1044480   ;;  %vm42_vm1 = vcmask 39936   ;;  %v41_v0 = vld [vmem:[#allocation5] sm:$0x1f] }
   0xc   :  { %v40_v1 = vld [vmem:[#allocation2] sm:$0x3f]  ;;  %89 = vmatpush.msk.msra.mxu0 %vm46_vm0, %v41_v0  ;;  %s174_s0 = smov [#allocation7]   ;;  %s78_s21 = sshll.u32 %s201_s2, 4  ;;  %s79_s21 = int_to_ptr.hbm [resolvable:$true] %s78_s21 }
   0xd   :  { %90 = vmatmul.msk.f32.vlgmr.msra.gmra.mxu0 %vm42_vm1, %v40_v1  ;;  %s76_s19 = sshll.u32 %s174_s0, 4  ;;  %s77_s19 = int_to_ptr.vmem [resolvable:$true] %s76_s19 }
  0x8a   :  { %v67_v2 = vpop.f32.mrf.mxu0 }
  0x8b   :  { %70 = vst [vmem:[#allocation7] sm:$0x3f] %v67_v2 }
  0x8c   :  { %81 = dma.vmem_to_hbm [thread:$0]  %s77_s19, 128, %s79_s21, [#allocation4]  }
  0x8d   :  { %170 = dma.done.wait [#allocation4], 128  }
  0x8e   :  { %171 = vsyncadd [#allocation4], 4294967168 }
  0x8f   :  { %86 = vsyncpa [#allocation3], 1 }
  0x90   :  { %87 = vsyncpa [#allocation6], 1 }
  0x91   :  { %88 = vsyncpa [#allocation4], 1 }

</bundles_post_ra>
